<compile_context>
chip_gen: v5e
topology: v5e:2x2
jax: 0.10.0
libtpu: 0.0.40
codegen_flags: <defaults>
</compile_context>

<pallas_src>
import functools
import math

import jax
import jax.numpy as jnp
from jax import lax
from jax.experimental import pallas as pl
from jax.experimental.pallas import tpu as pltpu

# ---- hyper-params (small, consistent with the module) ----
H_DIM = 32
MLP_DIM = 64
HEAD_DIM = 8
N_HEADS = 4
N_LAYERS = 2
BATCH = 2
SEQ = 8

LN_EPS = 1e-5
ATTN_EPS = 1e-6
GELU_C = math.sqrt(2.0 / math.pi)


def _phi(x):
    # F.elu(x) + 1  (alpha = 1)
    return jnp.where(x > 0, x + 1.0, jnp.exp(jnp.minimum(x, 0.0)))


def _gelu(x):
    return 0.5 * x * (1.0 + jnp.tanh(GELU_C * (x + 0.044715 * x * x * x)))


def _layernorm(x, w, b):
    mean = jnp.mean(x, axis=-1, keepdims=True)
    var = jnp.mean(jnp.square(x - mean), axis=-1, keepdims=True)
    return (x - mean) * lax.rsqrt(var + LN_EPS) * w + b


def block_kernel(x_ref, ln1w, ln1b, wqkv, bqkv, wo, bo,
                 ln2w, ln2b, wfc, bfc, wpr, bpr,
                 causal_mask, head_sum, o_ref, *, d):
    x = x_ref[...]                                   # (B*S, H)

    # ---- ln1 ----
    ln_x = _layernorm(x, ln1w[...], ln1b[...])

    # ---- fused q/k/v projection (one MXU matmul, N = 3d = 96 lanes) ----
    qkv = jnp.dot(ln_x, wqkv[...], preferred_element_type=jnp.float32) + bqkv[...]
    q = qkv[:, :d]
    k = qkv[:, d:2 * d]
    v = qkv[:, 2 * d:]

    q_phi = _phi(q)
    k_phi = _phi(k)

    # ---- fused causal cumulative sums via one block-diagonal-tril matmul ----
    #   cum[:, :d]  = cumsum_j<=i (k_phi[j] * v[j])   (per batch, diagonal of kv outer prod)
    #   cum[:, d:]  = cumsum_j<=i  k_phi[j]
    cat = jnp.concatenate([k_phi * v, k_phi], axis=1)               # (B*S, 2d)
    cum = jnp.dot(causal_mask[...], cat,
                  preferred_element_type=jnp.float32)               # (B*S, 2d)

    num = q_phi * cum[:, :d]                                        # (B*S, d)
    # per-head reduction of q_phi * k_phi_cumsum broadcast back to head dims,
    # done as a block-diagonal ones matmul (host-precomputed, stays on MXU)
    den = jnp.dot(q_phi * cum[:, d:], head_sum[...],
                  preferred_element_type=jnp.float32)               # (B*S, d)

    attn = num / (den + ATTN_EPS)

    attn_y = jnp.dot(attn, wo[...], preferred_element_type=jnp.float32) + bo[...]
    x1 = x + attn_y

    # ---- ln2 + MLP ----
    ln_x2 = _layernorm(x1, ln2w[...], ln2b[...])
    h = jnp.dot(ln_x2, wfc[...], preferred_element_type=jnp.float32) + bfc[...]
    h = _gelu(h)
    mlp_y = jnp.dot(h, wpr[...], preferred_element_type=jnp.float32) + bpr[...]

    o_ref[...] = x1 + mlp_y


def init_params(key):
    dk = HEAD_DIM * N_HEADS
    keys = jax.random.split(key, 6)
    std = 0.02
    p = {
        "ln1_w": jnp.ones((1, H_DIM), jnp.float32),
        "ln1_b": jnp.zeros((1, H_DIM), jnp.float32),
        "wq": std * jax.random.normal(keys[0], (H_DIM, dk), jnp.float32),
        "bq": jnp.zeros((1, dk), jnp.float32),
        "wk": std * jax.random.normal(keys[1], (H_DIM, dk), jnp.float32),
        "bk": jnp.zeros((1, dk), jnp.float32),
        "wv": std * jax.random.normal(keys[2], (H_DIM, dk), jnp.float32),
        "bv": jnp.zeros((1, dk), jnp.float32),
        "wo": std * jax.random.normal(keys[3], (dk, H_DIM), jnp.float32),
        "bo": jnp.zeros((1, H_DIM), jnp.float32),
        "ln2_w": jnp.ones((1, H_DIM), jnp.float32),
        "ln2_b": jnp.zeros((1, H_DIM), jnp.float32),
        "wfc": std * jax.random.normal(keys[4], (H_DIM, MLP_DIM), jnp.float32),
        "bfc": jnp.zeros((1, MLP_DIM), jnp.float32),
        "wpr": (std / math.sqrt(2 * N_LAYERS))
               * jax.random.normal(keys[5], (MLP_DIM, H_DIM), jnp.float32),
        "bpr": jnp.zeros((1, H_DIM), jnp.float32),
    }
    return p


@jax.jit
def block_forward(x, params):
    B, S, H = x.shape
    BS = B * S
    d = N_HEADS * HEAD_DIM

    # fused q/k/v weights (trace-time concat of tiny params, folded by XLA)
    wqkv = jnp.concatenate([params["wq"], params["wk"], params["wv"]], axis=1)   # (H, 3d)
    bqkv = jnp.concatenate([params["bq"], params["bk"], params["bv"]], axis=1)   # (1, 3d)

    # block-diagonal causal mask over the flattened B*S rows: same batch AND row >= col
    r = jnp.arange(BS)
    causal_mask = ((r[:, None] // S == r[None, :] // S)
                   & (r[:, None] >= r[None, :])).astype(jnp.float32)             # (BS, BS)
    # block-diagonal ones for the per-head denominator reduction
    c = jnp.arange(d)
    head_sum = (c[:, None] // HEAD_DIM == c[None, :] // HEAD_DIM).astype(jnp.float32)  # (d, d)

    weights = [params["ln1_w"], params["ln1_b"], wqkv, bqkv,
               params["wo"], params["bo"], params["ln2_w"], params["ln2_b"],
               params["wfc"], params["bfc"], params["wpr"], params["bpr"],
               causal_mask, head_sum]

    x2d = x.reshape(BS, H)

    in_specs = [pl.BlockSpec((BS, H), lambda i: (0, 0))]
    in_specs += [pl.BlockSpec(w.shape, lambda i: (0, 0)) for w in weights]

    kernel = functools.partial(block_kernel, d=d)

    out = pl.pallas_call(
        kernel,
        out_shape=jax.ShapeDtypeStruct((BS, H), x.dtype),
        grid=(1,),
        in_specs=in_specs,
        out_specs=pl.BlockSpec((BS, H), lambda i: (0, 0)),
        compiler_params=pltpu.CompilerParams(
            dimension_semantics=("arbitrary",)),
    )(x2d, *weights)
    return out.reshape(B, S, H)


# ---------------- pure-JAX reference (mirrors the PyTorch forward) -------------
def block_ref(x, p):
    def ln(t, w, b):
        mean = t.mean(-1, keepdims=True)
        var = ((t - mean) ** 2).mean(-1, keepdims=True)
        return (t - mean) / jnp.sqrt(var + LN_EPS) * w[0] + b[0]

    B, S, H = x.shape
    ln_x = ln(x, p["ln1_w"], p["ln1_b"])
    q = ln_x @ p["wq"] + p["bq"][0]
    k = ln_x @ p["wk"] + p["bk"][0]
    v = ln_x @ p["wv"] + p["bv"][0]
    q = q.reshape(B, S, N_HEADS, HEAD_DIM).transpose(0, 2, 1, 3)
    k = k.reshape(B, S, N_HEADS, HEAD_DIM).transpose(0, 2, 1, 3)
    v = v.reshape(B, S, N_HEADS, HEAD_DIM).transpose(0, 2, 1, 3)
    q_phi = _phi(q)
    k_phi = _phi(k)
    kv = k_phi[..., :, None] * v[..., None, :]
    kv_cumsum = jnp.cumsum(kv, axis=2)
    k_phi_cumsum = jnp.cumsum(k_phi, axis=2)
    num = jnp.einsum("bhid,bhidd->bhid", q_phi, kv_cumsum)
    den = jnp.einsum("bhid,bhid->bhi", q_phi, k_phi_cumsum)
    out = num / (den[..., None] + ATTN_EPS)
    out = out.transpose(0, 2, 1, 3).reshape(B, S, -1)
    y = out @ p["wo"] + p["bo"][0]
    x1 = x + y
    h = ln(x1, p["ln2_w"], p["ln2_b"]) @ p["wfc"] + p["bfc"][0]
    h = _gelu(h)
    return x1 + (h @ p["wpr"] + p["bpr"][0])


if __name__ == "__main__":
    key = jax.random.PRNGKey(0)
    k_x, k_p = jax.random.split(key)
    x = jax.random.normal(k_x, (BATCH, SEQ, H_DIM), jnp.float32)
    params = init_params(k_p)

    out = block_forward(x, params)
    out = jax.block_until_ready(out)

    ref = block_ref(x, params)
    assert out.shape == (BATCH, SEQ, H_DIM)
    assert jnp.allclose(out, ref, rtol=1e-3, atol=1e-3), \
        float(jnp.max(jnp.abs(out - ref)))

    print("KERNEL_OK")
</pallas_src>

<mosaic_0001>
module attributes {stable_mosaic.version = 11 : i64} {
  func.func @block_kernel(%arg0: i32, %arg1: memref<16x32xf32, #tpu.memory_space<vmem>>, %arg2: memref<1x32xf32, #tpu.memory_space<vmem>>, %arg3: memref<1x32xf32, #tpu.memory_space<vmem>>, %arg4: memref<32x96xf32, #tpu.memory_space<vmem>>, %arg5: memref<1x96xf32, #tpu.memory_space<vmem>>, %arg6: memref<32x32xf32, #tpu.memory_space<vmem>>, %arg7: memref<1x32xf32, #tpu.memory_space<vmem>>, %arg8: memref<1x32xf32, #tpu.memory_space<vmem>>, %arg9: memref<1x32xf32, #tpu.memory_space<vmem>>, %arg10: memref<32x64xf32, #tpu.memory_space<vmem>>, %arg11: memref<1x64xf32, #tpu.memory_space<vmem>>, %arg12: memref<64x32xf32, #tpu.memory_space<vmem>>, %arg13: memref<1x32xf32, #tpu.memory_space<vmem>>, %arg14: memref<16x16xf32, #tpu.memory_space<vmem>>, %arg15: memref<32x32xf32, #tpu.memory_space<vmem>>, %arg16: memref<16x32xf32, #tpu.memory_space<vmem>>) attributes {dimension_semantics = [#tpu.dimension_semantics<arbitrary>], iteration_bounds = array<i64: 1>, scalar_prefetch = 0 : i64, scratch_operands = 0 : i64, tpu.core_type = #tpu.core_type<tc>, window_params = [{pipeline_mode = #tpu.pipeline_mode<synchronous>, transform_indices = @transform_0, window_bounds = array<i64: 16, 32>}, {pipeline_mode = #tpu.pipeline_mode<synchronous>, transform_indices = @transform_1, window_bounds = array<i64: 1, 32>}, {pipeline_mode = #tpu.pipeline_mode<synchronous>, transform_indices = @transform_2, window_bounds = array<i64: 1, 32>}, {pipeline_mode = #tpu.pipeline_mode<synchronous>, transform_indices = @transform_3, window_bounds = array<i64: 32, 96>}, {pipeline_mode = #tpu.pipeline_mode<synchronous>, transform_indices = @transform_4, window_bounds = array<i64: 1, 96>}, {pipeline_mode = #tpu.pipeline_mode<synchronous>, transform_indices = @transform_5, window_bounds = array<i64: 32, 32>}, {pipeline_mode = #tpu.pipeline_mode<synchronous>, transform_indices = @transform_6, window_bounds = array<i64: 1, 32>}, {pipeline_mode = #tpu.pipeline_mode<synchronous>, transform_indices = @transform_7, window_bounds = array<i64: 1, 32>}, {pipeline_mode = #tpu.pipeline_mode<synchronous>, transform_indices = @transform_8, window_bounds = array<i64: 1, 32>}, {pipeline_mode = #tpu.pipeline_mode<synchronous>, transform_indices = @transform_9, window_bounds = array<i64: 32, 64>}, {pipeline_mode = #tpu.pipeline_mode<synchronous>, transform_indices = @transform_10, window_bounds = array<i64: 1, 64>}, {pipeline_mode = #tpu.pipeline_mode<synchronous>, transform_indices = @transform_11, window_bounds = array<i64: 64, 32>}, {pipeline_mode = #tpu.pipeline_mode<synchronous>, transform_indices = @transform_12, window_bounds = array<i64: 1, 32>}, {pipeline_mode = #tpu.pipeline_mode<synchronous>, transform_indices = @transform_13, window_bounds = array<i64: 16, 16>}, {pipeline_mode = #tpu.pipeline_mode<synchronous>, transform_indices = @transform_14, window_bounds = array<i64: 32, 32>}, {pipeline_mode = #tpu.pipeline_mode<synchronous>, transform_indices = @transform_15, window_bounds = array<i64: 16, 32>}]} {
    %c0 = arith.constant 0 : index
    %c0_0 = arith.constant 0 : index
    %0 = vector.load %arg1[%c0, %c0_0] : memref<16x32xf32, #tpu.memory_space<vmem>>, vector<16x32xf32>
    %c0_1 = arith.constant 0 : index
    %c0_2 = arith.constant 0 : index
    %1 = vector.load %arg2[%c0_1, %c0_2] : memref<1x32xf32, #tpu.memory_space<vmem>>, vector<1x32xf32>
    %c0_3 = arith.constant 0 : index
    %c0_4 = arith.constant 0 : index
    %2 = vector.load %arg3[%c0_3, %c0_4] : memref<1x32xf32, #tpu.memory_space<vmem>>, vector<1x32xf32>
    %cst = arith.constant dense<0.000000e+00> : vector<16xf32>
    %3 = vector.multi_reduction <add>, %0, %cst [1] : vector<16x32xf32> to vector<16xf32>
    %4 = vector.shape_cast %3 : vector<16xf32> to vector<16x1xf32>
    %cst_5 = arith.constant 3.200000e+01 : f32
    %5 = vector.broadcast %cst_5 : f32 to vector<16x1xf32>
    %6 = arith.divf %4, %5 : vector<16x1xf32>
    %7 = vector.broadcast %6 : vector<16x1xf32> to vector<16x32xf32>
    %8 = arith.subf %0, %7 : vector<16x32xf32>
    %9 = arith.mulf %8, %8 : vector<16x32xf32>
    %cst_6 = arith.constant dense<0.000000e+00> : vector<16xf32>
    %10 = vector.multi_reduction <add>, %9, %cst_6 [1] : vector<16x32xf32> to vector<16xf32>
    %11 = vector.shape_cast %10 : vector<16xf32> to vector<16x1xf32>
    %cst_7 = arith.constant 3.200000e+01 : f32
    %12 = vector.broadcast %cst_7 : f32 to vector<16x1xf32>
    %13 = arith.divf %11, %12 : vector<16x1xf32>
    %14 = vector.broadcast %6 : vector<16x1xf32> to vector<16x32xf32>
    %15 = arith.subf %0, %14 : vector<16x32xf32>
    %cst_8 = arith.constant 9.99999974E-6 : f32
    %16 = vector.broadcast %cst_8 : f32 to vector<16x1xf32>
    %17 = arith.addf %13, %16 : vector<16x1xf32>
    %18 = math.rsqrt %17 : vector<16x1xf32>
    %19 = vector.broadcast %18 : vector<16x1xf32> to vector<16x32xf32>
    %20 = arith.mulf %15, %19 : vector<16x32xf32>
    %21 = vector.broadcast %1 : vector<1x32xf32> to vector<16x32xf32>
    %22 = arith.mulf %20, %21 : vector<16x32xf32>
    %23 = vector.broadcast %2 : vector<1x32xf32> to vector<16x32xf32>
    %24 = arith.addf %22, %23 : vector<16x32xf32>
    %c0_9 = arith.constant 0 : index
    %c0_10 = arith.constant 0 : index
    %25 = vector.load %arg4[%c0_9, %c0_10] : memref<32x96xf32, #tpu.memory_space<vmem>>, vector<32x96xf32>
    %cst_11 = arith.constant dense<0.000000e+00> : vector<16x96xf32>
    %26 = tpu.matmul %24, %25, %cst_11 {dimension_numbers = #tpu.dot_dimension_numbers<[1], [0], [0], [1], [0, 0, 1, 1], [], []>} : vector<16x32xf32>, vector<32x96xf32>, vector<16x96xf32> -> vector<16x96xf32>
    %c0_12 = arith.constant 0 : index
    %c0_13 = arith.constant 0 : index
    %27 = vector.load %arg5[%c0_12, %c0_13] : memref<1x96xf32, #tpu.memory_space<vmem>>, vector<1x96xf32>
    %28 = vector.broadcast %27 : vector<1x96xf32> to vector<16x96xf32>
    %29 = arith.addf %26, %28 : vector<16x96xf32>
    %30 = vector.extract_strided_slice %29 {offsets = [0, 0], sizes = [16, 32], strides = [1, 1]} : vector<16x96xf32> to vector<16x32xf32>
    %31 = vector.extract_strided_slice %29 {offsets = [0, 32], sizes = [16, 32], strides = [1, 1]} : vector<16x96xf32> to vector<16x32xf32>
    %32 = vector.extract_strided_slice %29 {offsets = [0, 64], sizes = [16, 32], strides = [1, 1]} : vector<16x96xf32> to vector<16x32xf32>
    %cst_14 = arith.constant 0.000000e+00 : f32
    %33 = vector.broadcast %cst_14 : f32 to vector<16x32xf32>
    %34 = arith.cmpf ogt, %30, %33 : vector<16x32xf32>
    %cst_15 = arith.constant 1.000000e+00 : f32
    %35 = vector.broadcast %cst_15 : f32 to vector<16x32xf32>
    %36 = arith.addf %30, %35 : vector<16x32xf32>
    %cst_16 = arith.constant 0.000000e+00 : f32
    %37 = vector.broadcast %cst_16 : f32 to vector<16x32xf32>
    %38 = arith.minimumf %30, %37 : vector<16x32xf32>
    %39 = math.exp %38 : vector<16x32xf32>
    %40 = arith.select %34, %36, %39 : vector<16x32xi1>, vector<16x32xf32>
    %cst_17 = arith.constant 0.000000e+00 : f32
    %41 = vector.broadcast %cst_17 : f32 to vector<16x32xf32>
    %42 = arith.cmpf ogt, %31, %41 : vector<16x32xf32>
    %cst_18 = arith.constant 1.000000e+00 : f32
    %43 = vector.broadcast %cst_18 : f32 to vector<16x32xf32>
    %44 = arith.addf %31, %43 : vector<16x32xf32>
    %cst_19 = arith.constant 0.000000e+00 : f32
    %45 = vector.broadcast %cst_19 : f32 to vector<16x32xf32>
    %46 = arith.minimumf %31, %45 : vector<16x32xf32>
    %47 = math.exp %46 : vector<16x32xf32>
    %48 = arith.select %42, %44, %47 : vector<16x32xi1>, vector<16x32xf32>
    %49 = arith.mulf %48, %32 : vector<16x32xf32>
    %50 = tpu.concatenate %49, %48 in 1 : vector<16x32xf32>, vector<16x32xf32> -> vector<16x64xf32>
    %c0_20 = arith.constant 0 : index
    %c0_21 = arith.constant 0 : index
    %51 = vector.load %arg14[%c0_20, %c0_21] : memref<16x16xf32, #tpu.memory_space<vmem>>, vector<16x16xf32>
    %cst_22 = arith.constant dense<0.000000e+00> : vector<16x64xf32>
    %52 = tpu.matmul %51, %50, %cst_22 {dimension_numbers = #tpu.dot_dimension_numbers<[1], [0], [0], [1], [0, 0, 1, 1], [], []>} : vector<16x16xf32>, vector<16x64xf32>, vector<16x64xf32> -> vector<16x64xf32>
    %53 = vector.extract_strided_slice %52 {offsets = [0, 0], sizes = [16, 32], strides = [1, 1]} : vector<16x64xf32> to vector<16x32xf32>
    %54 = arith.mulf %40, %53 : vector<16x32xf32>
    %55 = vector.extract_strided_slice %52 {offsets = [0, 32], sizes = [16, 32], strides = [1, 1]} : vector<16x64xf32> to vector<16x32xf32>
    %56 = arith.mulf %40, %55 : vector<16x32xf32>
    %c0_23 = arith.constant 0 : index
    %c0_24 = arith.constant 0 : index
    %57 = vector.load %arg15[%c0_23, %c0_24] : memref<32x32xf32, #tpu.memory_space<vmem>>, vector<32x32xf32>
    %cst_25 = arith.constant dense<0.000000e+00> : vector<16x32xf32>
    %58 = tpu.matmul %56, %57, %cst_25 {dimension_numbers = #tpu.dot_dimension_numbers<[1], [0], [0], [1], [0, 0, 1, 1], [], []>} : vector<16x32xf32>, vector<32x32xf32>, vector<16x32xf32> -> vector<16x32xf32>
    %cst_26 = arith.constant 9.99999997E-7 : f32
    %59 = vector.broadcast %cst_26 : f32 to vector<16x32xf32>
    %60 = arith.addf %58, %59 : vector<16x32xf32>
    %61 = arith.divf %54, %60 : vector<16x32xf32>
    %c0_27 = arith.constant 0 : index
    %c0_28 = arith.constant 0 : index
    %62 = vector.load %arg6[%c0_27, %c0_28] : memref<32x32xf32, #tpu.memory_space<vmem>>, vector<32x32xf32>
    %cst_29 = arith.constant dense<0.000000e+00> : vector<16x32xf32>
    %63 = tpu.matmul %61, %62, %cst_29 {dimension_numbers = #tpu.dot_dimension_numbers<[1], [0], [0], [1], [0, 0, 1, 1], [], []>} : vector<16x32xf32>, vector<32x32xf32>, vector<16x32xf32> -> vector<16x32xf32>
    %c0_30 = arith.constant 0 : index
    %c0_31 = arith.constant 0 : index
    %64 = vector.load %arg7[%c0_30, %c0_31] : memref<1x32xf32, #tpu.memory_space<vmem>>, vector<1x32xf32>
    %65 = vector.broadcast %64 : vector<1x32xf32> to vector<16x32xf32>
    %66 = arith.addf %63, %65 : vector<16x32xf32>
    %67 = arith.addf %0, %66 : vector<16x32xf32>
    %c0_32 = arith.constant 0 : index
    %c0_33 = arith.constant 0 : index
    %68 = vector.load %arg8[%c0_32, %c0_33] : memref<1x32xf32, #tpu.memory_space<vmem>>, vector<1x32xf32>
    %c0_34 = arith.constant 0 : index
    %c0_35 = arith.constant 0 : index
    %69 = vector.load %arg9[%c0_34, %c0_35] : memref<1x32xf32, #tpu.memory_space<vmem>>, vector<1x32xf32>
    %cst_36 = arith.constant dense<0.000000e+00> : vector<16xf32>
    %70 = vector.multi_reduction <add>, %67, %cst_36 [1] : vector<16x32xf32> to vector<16xf32>
    %71 = vector.shape_cast %70 : vector<16xf32> to vector<16x1xf32>
    %cst_37 = arith.constant 3.200000e+01 : f32
    %72 = vector.broadcast %cst_37 : f32 to vector<16x1xf32>
    %73 = arith.divf %71, %72 : vector<16x1xf32>
    %74 = vector.broadcast %73 : vector<16x1xf32> to vector<16x32xf32>
    %75 = arith.subf %67, %74 : vector<16x32xf32>
    %76 = arith.mulf %75, %75 : vector<16x32xf32>
    %cst_38 = arith.constant dense<0.000000e+00> : vector<16xf32>
    %77 = vector.multi_reduction <add>, %76, %cst_38 [1] : vector<16x32xf32> to vector<16xf32>
    %78 = vector.shape_cast %77 : vector<16xf32> to vector<16x1xf32>
    %cst_39 = arith.constant 3.200000e+01 : f32
    %79 = vector.broadcast %cst_39 : f32 to vector<16x1xf32>
    %80 = arith.divf %78, %79 : vector<16x1xf32>
    %81 = vector.broadcast %73 : vector<16x1xf32> to vector<16x32xf32>
    %82 = arith.subf %67, %81 : vector<16x32xf32>
    %cst_40 = arith.constant 9.99999974E-6 : f32
    %83 = vector.broadcast %cst_40 : f32 to vector<16x1xf32>
    %84 = arith.addf %80, %83 : vector<16x1xf32>
    %85 = math.rsqrt %84 : vector<16x1xf32>
    %86 = vector.broadcast %85 : vector<16x1xf32> to vector<16x32xf32>
    %87 = arith.mulf %82, %86 : vector<16x32xf32>
    %88 = vector.broadcast %68 : vector<1x32xf32> to vector<16x32xf32>
    %89 = arith.mulf %87, %88 : vector<16x32xf32>
    %90 = vector.broadcast %69 : vector<1x32xf32> to vector<16x32xf32>
    %91 = arith.addf %89, %90 : vector<16x32xf32>
    %c0_41 = arith.constant 0 : index
    %c0_42 = arith.constant 0 : index
    %92 = vector.load %arg10[%c0_41, %c0_42] : memref<32x64xf32, #tpu.memory_space<vmem>>, vector<32x64xf32>
    %cst_43 = arith.constant dense<0.000000e+00> : vector<16x64xf32>
    %93 = tpu.matmul %91, %92, %cst_43 {dimension_numbers = #tpu.dot_dimension_numbers<[1], [0], [0], [1], [0, 0, 1, 1], [], []>} : vector<16x32xf32>, vector<32x64xf32>, vector<16x64xf32> -> vector<16x64xf32>
    %c0_44 = arith.constant 0 : index
    %c0_45 = arith.constant 0 : index
    %94 = vector.load %arg11[%c0_44, %c0_45] : memref<1x64xf32, #tpu.memory_space<vmem>>, vector<1x64xf32>
    %95 = vector.broadcast %94 : vector<1x64xf32> to vector<16x64xf32>
    %96 = arith.addf %93, %95 : vector<16x64xf32>
    %cst_46 = arith.constant 5.000000e-01 : f32
    %97 = vector.broadcast %cst_46 : f32 to vector<16x64xf32>
    %98 = arith.mulf %97, %96 : vector<16x64xf32>
    %cst_47 = arith.constant 4.471500e-02 : f32
    %99 = vector.broadcast %cst_47 : f32 to vector<16x64xf32>
    %100 = arith.mulf %99, %96 : vector<16x64xf32>
    %101 = arith.mulf %100, %96 : vector<16x64xf32>
    %102 = arith.mulf %101, %96 : vector<16x64xf32>
    %103 = arith.addf %96, %102 : vector<16x64xf32>
    %cst_48 = arith.constant 0.797884583 : f32
    %104 = vector.broadcast %cst_48 : f32 to vector<16x64xf32>
    %105 = arith.mulf %104, %103 : vector<16x64xf32>
    %106 = math.tanh %105 : vector<16x64xf32>
    %cst_49 = arith.constant 1.000000e+00 : f32
    %107 = vector.broadcast %cst_49 : f32 to vector<16x64xf32>
    %108 = arith.addf %107, %106 : vector<16x64xf32>
    %109 = arith.mulf %98, %108 : vector<16x64xf32>
    %c0_50 = arith.constant 0 : index
    %c0_51 = arith.constant 0 : index
    %110 = vector.load %arg12[%c0_50, %c0_51] : memref<64x32xf32, #tpu.memory_space<vmem>>, vector<64x32xf32>
    %cst_52 = arith.constant dense<0.000000e+00> : vector<16x32xf32>
    %111 = tpu.matmul %109, %110, %cst_52 {dimension_numbers = #tpu.dot_dimension_numbers<[1], [0], [0], [1], [0, 0, 1, 1], [], []>} : vector<16x64xf32>, vector<64x32xf32>, vector<16x32xf32> -> vector<16x32xf32>
    %c0_53 = arith.constant 0 : index
    %c0_54 = arith.constant 0 : index
    %112 = vector.load %arg13[%c0_53, %c0_54] : memref<1x32xf32, #tpu.memory_space<vmem>>, vector<1x32xf32>
    %113 = vector.broadcast %112 : vector<1x32xf32> to vector<16x32xf32>
    %114 = arith.addf %111, %113 : vector<16x32xf32>
    %115 = arith.addf %67, %114 : vector<16x32xf32>
    %c0_55 = arith.constant 0 : index
    %c0_56 = arith.constant 0 : index
    %116 = vector.load %arg16[%c0_55, %c0_56] : memref<16x32xf32, #tpu.memory_space<vmem>>, vector<16x32xf32>
    tpu.vector_store %arg16[%c0_55, %c0_56], %115 {strides = array<i32>} : memref<16x32xf32, #tpu.memory_space<vmem>>, vector<16x32xf32>,
    return
  }
  func.func @transform_0(%arg0: i32) -> (i32, i32) {
    %c0_i32 = arith.constant 0 : i32
    %c0_i32_0 = arith.constant 0 : i32
    %c0_i32_1 = arith.constant 0 : i32
    return %c0_i32, %c0_i32_0 : i32, i32
  }
  func.func @transform_1(%arg0: i32) -> (i32, i32) {
    %c0_i32 = arith.constant 0 : i32
    %c0_i32_0 = arith.constant 0 : i32
    %c0_i32_1 = arith.constant 0 : i32
    return %c0_i32, %c0_i32_0 : i32, i32
  }
  func.func @transform_2(%arg0: i32) -> (i32, i32) {
    %c0_i32 = arith.constant 0 : i32
    %c0_i32_0 = arith.constant 0 : i32
    %c0_i32_1 = arith.constant 0 : i32
    return %c0_i32, %c0_i32_0 : i32, i32
  }
  func.func @transform_3(%arg0: i32) -> (i32, i32) {
    %c0_i32 = arith.constant 0 : i32
    %c0_i32_0 = arith.constant 0 : i32
    %c0_i32_1 = arith.constant 0 : i32
    return %c0_i32, %c0_i32_0 : i32, i32
  }
  func.func @transform_4(%arg0: i32) -> (i32, i32) {
    %c0_i32 = arith.constant 0 : i32
    %c0_i32_0 = arith.constant 0 : i32
    %c0_i32_1 = arith.constant 0 : i32
    return %c0_i32, %c0_i32_0 : i32, i32
  }
  func.func @transform_5(%arg0: i32) -> (i32, i32) {
    %c0_i32 = arith.constant 0 : i32
    %c0_i32_0 = arith.constant 0 : i32
    %c0_i32_1 = arith.constant 0 : i32
    return %c0_i32, %c0_i32_0 : i32, i32
  }
  func.func @transform_6(%arg0: i32) -> (i32, i32) {
    %c0_i32 = arith.constant 0 : i32
    %c0_i32_0 = arith.constant 0 : i32
    %c0_i32_1 = arith.constant 0 : i32
    return %c0_i32, %c0_i32_0 : i32, i32
  }
  func.func @transform_7(%arg0: i32) -> (i32, i32) {
    %c0_i32 = arith.constant 0 : i32
    %c0_i32_0 = arith.constant 0 : i32
    %c0_i32_1 = arith.constant 0 : i32
    return %c0_i32, %c0_i32_0 : i32, i32
  }
  func.func @transform_8(%arg0: i32) -> (i32, i32) {
    %c0_i32 = arith.constant 0 : i32
    %c0_i32_0 = arith.constant 0 : i32
    %c0_i32_1 = arith.constant 0 : i32
    return %c0_i32, %c0_i32_0 : i32, i32
  }
  func.func @transform_9(%arg0: i32) -> (i32, i32) {
    %c0_i32 = arith.constant 0 : i32
    %c0_i32_0 = arith.constant 0 : i32
    %c0_i32_1 = arith.constant 0 : i32
    return %c0_i32, %c0_i32_0 : i32, i32
  }
  func.func @transform_10(%arg0: i32) -> (i32, i32) {
    %c0_i32 = arith.constant 0 : i32
    %c0_i32_0 = arith.constant 0 : i32
    %c0_i32_1 = arith.constant 0 : i32
    return %c0_i32, %c0_i32_0 : i32, i32
  }
  func.func @transform_11(%arg0: i32) -> (i32, i32) {
    %c0_i32 = arith.constant 0 : i32
    %c0_i32_0 = arith.constant 0 : i32
    %c0_i32_1 = arith.constant 0 : i32
    return %c0_i32, %c0_i32_0 : i32, i32
  }
  func.func @transform_12(%arg0: i32) -> (i32, i32) {
    %c0_i32 = arith.constant 0 : i32
    %c0_i32_0 = arith.constant 0 : i32
    %c0_i32_1 = arith.constant 0 : i32
    return %c0_i32, %c0_i32_0 : i32, i32
  }
  func.func @transform_13(%arg0: i32) -> (i32, i32) {
    %c0_i32 = arith.constant 0 : i32
    %c0_i32_0 = arith.constant 0 : i32
    %c0_i32_1 = arith.constant 0 : i32
    return %c0_i32, %c0_i32_0 : i32, i32
  }
  func.func @transform_14(%arg0: i32) -> (i32, i32) {
    %c0_i32 = arith.constant 0 : i32
    %c0_i32_0 = arith.constant 0 : i32
    %c0_i32_1 = arith.constant 0 : i32
    return %c0_i32, %c0_i32_0 : i32, i32
  }
  func.func @transform_15(%arg0: i32) -> (i32, i32) {
    %c0_i32 = arith.constant 0 : i32
    %c0_i32_0 = arith.constant 0 : i32
    %c0_i32_1 = arith.constant 0 : i32
    return %c0_i32, %c0_i32_0 : i32, i32
  }
}

</mosaic_0001>

<bundles_post_ra>
// kernel: block_forward.1
= control target key start
LH: loop header
LB: loop body
LE: loop exit
PB: predicated region body
PF: predicated region fallthrough
CT: control target
= control target key end

     0   :  { %vm55_vm0 = vcmask 261120   ;;  %s858_s0 = inlined_call_operand.vmem [shape: f32[16,32], index: 0, kind: input, shape index: {}]   ;;  %s859_s1 = inlined_call_operand.vmem [shape: f32[1,32], index: 1, kind: input, shape index: {}]   ;;  %s860_s2 = inlined_call_operand.vmem [shape: f32[1,32], index: 2, kind: input, shape index: {}]   ;;  %s861_s3 = inlined_call_operand.vmem [shape: f32[32,96], index: 3, kind: input, shape index: {}]   ;;  %s862_s4 = inlined_call_operand.vmem [shape: f32[1,96], index: 4, kind: input, shape index: {}]   ;;  %s863_s5 = inlined_call_operand.vmem [shape: f32[32,32], index: 5, kind: input, shape index: {}]   ;;  %s864_s6 = inlined_call_operand.vmem [shape: f32[1,32], index: 6, kind: input, shape index: {}]   ;;  %s865_s7 = inlined_call_operand.vmem [shape: f32[1,32], index: 7, kind: input, shape index: {}]   ;;  %s866_s8 = inlined_call_operand.vmem [shape: f32[1,32], index: 8, kind: input, shape index: {}]   ;;  %s867_s9 = inlined_call_operand.vmem [shape: f32[32,64], index: 9, kind: input, shape index: {}]   ;;  %s868_s10 = inlined_call_operand.vmem [shape: f32[1,64], index: 10, kind: input, shape index: {}]   ;;  %s869_s11 = inlined_call_operand.vmem [shape: f32[64,32], index: 11, kind: input, shape index: {}]   ;;  %s870_s12 = inlined_call_operand.vmem [shape: f32[1,32], index: 12, kind: input, shape index: {}]   ;;  %s871_s13 = inlined_call_operand.vmem [shape: f32[16,16], index: 13, kind: input, shape index: {}]   ;;  %s872_s14 = inlined_call_operand.vmem [shape: f32[32,32], index: 14, kind: input, shape index: {}]   ;;  %s873_s15 = inlined_call_operand.hbm [shape: f32[16,32], index: 15, kind: output, shape index: {}]  }
   0x1   :  { %v683_v0 = vld [vmem:[%s858_s0] sm:$0xff] }
   0x2   :  { %v56_v1 = vsel %vm55_vm0, %v683_v0, 0.0 }
   0x3   :  { %57 = vadd.xlane.f32.xlu0 %v56_v1 }
   0x4   :  { %20 = vsyncpa [#allocation3], 0  ;;  %v690_v2 = vld [vmem:[%s858_s0 + $0x8] sm:$0xff]  ;;  %v595_v4 = vmov 32.0   ;;  %v120_v21 = vld [vmem:[%s861_s3 + $0x18] sm:$0xff]  ;;  %vm188_vm10 = vcmask 130048  }
   0x5   :  { %v59_v3 = vsel %vm55_vm0, %v690_v2, 0.0  ;;  %547 = vrcp.f32 %v595_v4  ;;  %143 = vmatpush.msra.mxu0 %v120_v21  ;;  %v119_v22 = vld [vmem:[%s861_s3 + $0x10] sm:$0xff]  ;;  %v118_v23 = vld [vmem:[%s861_s3 + $0x8] sm:$0xff]  ;;  %v117_v24 = vld [vmem:[%s861_s3] sm:$0xff]  ;;  %s597_s18 = smov [#allocation2]   ;;  %s495_s0 = sshll.u32 %s873_s15, 4  ;;  %s496_s0 = int_to_ptr.hbm [resolvable:$true] %s495_s0 }
   0x6   :  { %v539_v39 = vld [vmem:[%s859_s1] ss:$0 sm:$0xff]  ;;  %v233_v21 = vld [vmem:[%s872_s14 + $0x18] sm:$0xff]  ;;  %s493_s19 = sshll.u32 %s597_s18, 4  ;;  %s494_s19 = int_to_ptr.vmem [resolvable:$true] %s493_s19 }
   0x7   :  { %144 = vmatpush.msra.mxu0 %v119_v22  ;;  %v540_v43 = vld [vmem:[%s860_s2] ss:$0 sm:$0xff]  ;;  %s596_s2 = smov 96   ;;  %v232_v22 = vld [vmem:[%s872_s14 + $0x10] sm:$0xff]  ;;  %252 = vmatpush.msra.mxu2 %v233_v21 }
   0x8   :  { %v541_v54 = vld [vmem:[%s862_s4] ss:$0 sm:$0xff] }
   0x9   :  { %145 = vmatpush.msra.mxu0 %v118_v23  ;;  %v231_v23 = vld [vmem:[%s872_s14 + $0x8] sm:$0xff]  ;;  %253 = vmatpush.msra.mxu2 %v232_v22 }
   0xb   :  { %60 = vadd.xlane.f32.xlu0 %v59_v3  ;;  %v548_v5 = vpop.eup %547  ;;  %146 = vmatpush.msra.mxu0 %v117_v24  ;;  %v230_v24 = vld [vmem:[%s872_s14] sm:$0xff] }
   0xc   :  { %v63_v6 = vmul.f32 32.0, %v548_v5  ;;  %vm67_vm1 = vweird.f32 %v548_v5  ;;  %254 = vmatpush.msra.mxu2 %v231_v23 }
   0xe   :  { %v64_v7 = vsub.f32 1.0, %v63_v6  ;;  %255 = vmatpush.msra.mxu2 %v230_v24 }
  0x10   :  { %v65_v8 = vmul.f32 %v548_v5, %v64_v7 }
  0x12   :  { %v66_v9 = vadd.f32 %v548_v5, %v65_v8 }
  0x14   :  { %v694_v10 = vsel %vm67_vm1, %v548_v5, %v66_v9 }
  0x76   :  { %v58_v11 = vpop.xlane.xlu0 %57 }
  0x77   :  { %v69_v12 = vmul.f32 %v694_v10, %v58_v11 }
  0x79   :  { %v71_v13 = vsub.f32 %v683_v0, %v69_v12 }
  0x7b   :  { %v73_v14 = vmul.f32 %v71_v13, %v71_v13 }
  0x7d   :  { %v75_v15 = vsel %vm55_vm0, %v73_v14, 0.0 }
  0x7e   :  { %76 = vadd.xlane.f32.xlu1 %v75_v15  ;;  %v61_v16 = vpop.xlane.xlu0 %60 }
  0x7f   :  { %v70_v17 = vmul.f32 %v694_v10, %v61_v16  ;;  %v186_v16 = vld [vmem:[%s871_s13] sm:$0xff] }
  0x81   :  { %v72_v18 = vsub.f32 %v690_v2, %v70_v17  ;;  %v187_v17 = vld [vmem:[%s871_s13 + $0x8] sm:$0xff] }
  0x83   :  { %v74_v19 = vmul.f32 %v72_v18, %v72_v18 }
  0x85   :  { %v78_v20 = vsel %vm55_vm0, %v74_v19, 0.0 }
  0x86   :  { %79 = vadd.xlane.f32.xlu1 %v78_v20 }
  0xf1   :  { %v77_v25 = vpop.xlane.xlu1 %76 }
  0xf2   :  { %v81_v26 = vmul.f32 %v77_v25, %v694_v10 }
  0xf4   :  { %v83_v27 = vadd.f32 1e-05, %v81_v26 }
  0xf6   :  { %549 = vrsqrt.f32 %v83_v27  ;;  %vm91_vm3 = vweird.f32 %v83_v27 }
  0xf9   :  { %v80_v28 = vpop.xlane.xlu1 %79 }
  0xfa   :  { %v82_v29 = vmul.f32 %v80_v28, %v694_v10 }
  0xfc   :  { %v550_v30 = vpop.eup %549  ;;  %v84_v31 = vadd.f32 1e-05, %v82_v29  ;;  %v296_v29 = vld [vmem:[%s863_s5 + $0x18] sm:$0xff] }
  0xfd   :  { %v86_v32 = vmul.f32 %v550_v30, %v83_v27  ;;  %vm92_vm2 = vweird.f32 %v550_v30 }
  0xfe   :  { %551 = vrsqrt.f32 %v84_v31  ;;  %vm93_vm4 = vmor %vm91_vm3, %vm92_vm2  ;;  %vm101_vm6 = vweird.f32 %v84_v31 }
  0xff   :  { %v87_v33 = vmul.f32 %v550_v30, %v86_v32  ;;  %v293_v32 = vld [vmem:[%s863_s5] sm:$0xff] }
 0x101   :  { %v88_v34 = vmul.f32 0.5, %v87_v33 }
 0x103   :  { %v89_v35 = vsub.f32 1.5, %v88_v34 }
 0x104   :  { %v552_v36 = vpop.eup %551 }
 0x105   :  { %v90_v37 = vmul.f32 %v550_v30, %v89_v35  ;;  %v96_v38 = vmul.f32 %v552_v36, %v84_v31  ;;  %vm102_vm5 = vweird.f32 %v552_v36  ;;  %v294_v31 = vld [vmem:[%s863_s5 + $0x8] sm:$0xff] }
 0x106   :  { %vm103_vm7 = vmor %vm101_vm6, %vm102_vm5 }
 0x107   :  { %v94_v40 = vsel %vm93_vm4, %v550_v30, %v90_v37  ;;  %v97_v41 = vmul.f32 %v552_v36, %v96_v38  ;;  %v295_v30 = vld [vmem:[%s863_s5 + $0x10] sm:$0xff] }
 0x108   :  { %v105_v42 = vmul.f32 %v94_v40, %v71_v13 }
 0x109   :  { %v98_v44 = vmul.f32 0.5, %v97_v41 }
 0x10a   :  { %v110_v45 = vmul.f32 %v539_v39, %v105_v42 }
 0x10b   :  { %v99_v46 = vsub.f32 1.5, %v98_v44 }
 0x10c   :  { %v115_v47 = vadd.f32 %v540_v43, %v110_v45 }
 0x10d   :  { %v100_v48 = vmul.f32 %v552_v36, %v99_v46 }
 0x10e   :  { %507 = vmatmul.msk.f32.vlgmr.msra.gmra.mxu0 %vm55_vm0, %v115_v47 }
 0x10f   :  { %v104_v49 = vsel %vm103_vm7, %v552_v36, %v100_v48 }
 0x110   :  { %v106_v50 = vmul.f32 %v104_v49, %v72_v18 }
 0x112   :  { %v111_v51 = vmul.f32 %v539_v39, %v106_v50 }
 0x114   :  { %v116_v52 = vadd.f32 %v540_v43, %v111_v51 }
 0x116   :  { %508 = vmatmul.msk.f32.gmra.mxu0 %vm55_vm0, %v116_v52 }
 0x18b   :  { %v148_v53 = vpop.f32.mrf.mxu0 }
 0x18c   :  { %v149_v57 = vadd.f32 %v541_v54, %v148_v53 }
 0x18e   :  { %v158_v58 = vmin.f32 %v149_v57, 0.0  ;;  %v156_v3 = vadd.f32 1.0, %v149_v57  ;;  %vm154_vm9 = vcmp.gt.f32.partialorder %v149_v57, 0.0 }
 0x190   :  { %v160_v60 = vmul.f32 1.442695, %v158_v58 }
 0x192   :  { %553 = vpow2.f32 %v160_v60 }
 0x193   :  { %v151_v55 = vpop.f32.mrf.mxu0 }
 0x194   :  { %v152_v56 = vadd.f32 %v541_v54, %v151_v55 }
 0x196   :  { %170 = vrot.lane.b32.xlu2 %v152_v56, %s596_s2  ;;  %v159_v59 = vmin.f32 %v152_v56, 0.0  ;;  %v157_v4 = vadd.f32 1.0, %v152_v56  ;;  %vm155_vm8 = vcmp.gt.f32.partialorder %v152_v56, 0.0 }
 0x198   :  { %v162_v61 = vmul.f32 1.442695, %v159_v59  ;;  %v554_v63 = vpop.eup %553 }
 0x199   :  { %v731_v6 = vsel %vm154_vm9, %v156_v3, %v554_v63 }
 0x19a   :  { %555 = vpow2.f32 %v162_v61  ;;  %v542_v61 = vld [vmem:[%s864_s6] ss:$0 sm:$0xff] }
 0x19e   :  { %168 = vrot.lane.b32.xlu2 %v149_v57, %s596_s2 }
 0x1a0   :  { %v556_v1 = vpop.eup %555 }
 0x1a1   :  { %v729_v5 = vsel %vm155_vm8, %v157_v4, %v556_v1 }
 0x1f0   :  { %v171_v62 = vpop.permute.xlu2 %170 }
 0x1f1   :  { %v175_v8 = vmul.f32 %v171_v62, %v729_v5 }
 0x1f8   :  { %v169_v7 = vpop.permute.xlu2 %168 }
 0x1f9   :  { %v174_v9 = vmul.f32 %v169_v7, %v731_v6 }
 0x1fb   :  { %v534_v11 = vpack.i.bf16 %v174_v9, %v175_v8 }
 0x1fd   :  { %535 = vrot.lane.b32.xlu0 %v534_v11, %s596_s2 }
 0x26f   :  { %v536_v12 = vpop.permute.xlu0 %535 }
 0x270   :  { %v538_v13 = vunpack.i.h.bf16 %v536_v12  ;;  %v537_v14 = vunpack.i.l.bf16 %v536_v12 }
 0x272   :  { %v185_v15 = vsel %vm55_vm0, %v537_v14, %v729_v5  ;;  %v184_v18 = vsel %vm55_vm0, %v538_v13, %v731_v6 }
 0x273   :  { %209 = vmatpush.msra.mxu1 %v185_v15  ;;  %519 = vmatpush.msra.mxu3 %v185_v15 }
 0x275   :  { %210 = vmatpush.msra.mxu1 %v184_v18  ;;  %520 = vmatpush.msra.mxu3 %v184_v18  ;;  %v390_v18 = vld [vmem:[%s867_s9 + $0x10] sm:$0xff] }
 0x276   :  { %509 = vmatmul.msk.f32.vlgmr.msra.gmra.mxu1 %vm188_vm10, %v186_v16  ;;  %510 = vmatmul.msk.f32.vlgmr.msra.gmra.mxu3 %vm188_vm10, %v187_v17  ;;  %v391_v17 = vld [vmem:[%s867_s9 + $0x18] sm:$0xff]  ;;  %vm455_vm10 = vcmask 523264  }
 0x277   :  { %319 = vmatpush.msrb.mxu3 %v296_v29  ;;  %414 = vmatpush.msrb.mxu1 %v391_v17 }
 0x279   :  { %320 = vmatpush.msrb.mxu3 %v295_v30  ;;  %415 = vmatpush.msrb.mxu1 %v390_v18  ;;  %v546_v18 = vld [vmem:[%s870_s12] ss:$0 sm:$0xff]  ;;  %s598_s12 = smov 128  }
 0x27b   :  { %321 = vmatpush.msrb.mxu3 %v294_v31 }
 0x27d   :  { %322 = vmatpush.msrb.mxu3 %v293_v32 }
 0x2f3   :  { %v212_v19 = vpop.f32.mrf.mxu1 }
 0x2f4   :  { %222 = vrot.lane.b32.xlu1 %v212_v19, %s596_s2  ;;  %v218_v46 = vmul.f32 %v212_v19, %v731_v6  ;;  %v389_v19 = vld [vmem:[%s867_s9 + $0x8] sm:$0xff] }
 0x2f5   :  { %416 = vmatpush.msrb.mxu1 %v389_v19 }
 0x2f9   :  { %v215_v20 = vpop.f32.mrf.mxu3 }
 0x2fa   :  { %224 = vrot.lane.b32.xlu2 %v215_v20, %s596_s2  ;;  %v219_v57 = vmul.f32 %v215_v20, %v729_v5  ;;  %v388_v20 = vld [vmem:[%s867_s9] sm:$0xff]  ;;  %s599_s9 = smov 8  }
 0x2fb   :  { %417 = vmatpush.msrb.mxu1 %v388_v20 }
 0x354   :  { %v225_v27 = vpop.permute.xlu2 %224 }
 0x355   :  { %v229_v28 = vmul.f32 %v225_v27, %v729_v5 }
 0x366   :  { %v223_v25 = vpop.permute.xlu1 %222 }
 0x367   :  { %v228_v26 = vmul.f32 %v223_v25, %v731_v6 }
 0x369   :  { %511 = vmatmul.msk.f32.vlgmr.msra.gmra.mxu2 %vm55_vm0, %v228_v26 }
 0x371   :  { %512 = vmatmul.msk.f32.gmra.mxu2 %vm55_vm0, %v229_v28 }
 0x3ec   :  { %v257_v33 = vpop.f32.mrf.mxu2 }
 0x3ed   :  { %v258_v34 = vadd.f32 1e-06, %v257_v33 }
 0x3ef   :  { %557 = vrcp.f32 %v258_v34  ;;  %v274_v40 = vand.u32 2147483648, %v258_v34  ;;  %v272_v42 = vand.u32 2147483647, %v258_v34  ;;  %vm268_vm12 = vweird.f32 %v258_v34 }
 0x3f1   :  { %v275_v45 = vor.u32 1.1754944e-38, %v274_v40  ;;  %vm273_vm14 = vcmp.eq.f32.partialorder %v272_v42, 8.507059e+37 }
 0x3f4   :  { %v260_v35 = vpop.f32.mrf.mxu2 }
 0x3f5   :  { %v558_v36 = vpop.eup %557  ;;  %v261_v37 = vadd.f32 1e-06, %v260_v35  ;;  %v543_v35 = vld [vmem:[%s865_s7] ss:$0 sm:$0xff] }
 0x3f6   :  { %v264_v38 = vmul.f32 %v558_v36, %v258_v34  ;;  %vm269_vm11 = vweird.f32 %v558_v36 }
 0x3f7   :  { %559 = vrcp.f32 %v261_v37  ;;  %vm270_vm13 = vmor %vm268_vm12, %vm269_vm11  ;;  %v289_v52 = vand.u32 2147483648, %v261_v37  ;;  %v287_v54 = vand.u32 2147483647, %v261_v37  ;;  %vm283_vm1 = vweird.f32 %v261_v37 }
 0x3f8   :  { %v265_v39 = vsub.f32 1.0, %v264_v38  ;;  %v544_v38 = vld [vmem:[%s866_s8] ss:$0 sm:$0xff] }
 0x3f9   :  { %v290_v56 = vor.u32 1.1754944e-38, %v289_v52  ;;  %vm288_vm3 = vcmp.eq.f32.partialorder %v287_v54, 8.507059e+37  ;;  %v446_v52 = vld [vmem:[%s869_s11 + $0x18] sm:$0xff]  ;;  %v444_v54 = vld [vmem:[%s869_s11 + $0x8] sm:$0xff] }
 0x3fa   :  { %v266_v41 = vmul.f32 %v558_v36, %v265_v39 }
 0x3fc   :  { %v267_v43 = vadd.f32 %v558_v36, %v266_v41 }
 0x3fd   :  { %v560_v44 = vpop.eup %559 }
 0x3fe   :  { %v279_v47 = vmul.f32 %v560_v44, %v261_v37  ;;  %v271_v48 = vsel %vm270_vm13, %v558_v36, %v267_v43  ;;  %vm284_vm15 = vweird.f32 %v560_v44 }
 0x3ff   :  { %v276_v49 = vsel %vm273_vm14, %v275_v45, %v271_v48  ;;  %vm285_vm2 = vmor %vm283_vm1, %vm284_vm15  ;;  %v450_v48 = vld [vmem:[%s869_s11 + $0x38] sm:$0xff] }
 0x400   :  { %v280_v50 = vsub.f32 1.0, %v279_v47  ;;  %v277_v51 = vmul.f32 %v276_v49, %v218_v46  ;;  %470 = vmatpush.msrb.mxu0 %v450_v48  ;;  %521 = vmatpush.msrb.mxu2 %v450_v48  ;;  %v449_v49 = vld [vmem:[%s869_s11 + $0x30] sm:$0xff] }
 0x402   :  { %513 = vmatmul.msk.f32.vlgmr.msrb.gmra.mxu3 %vm55_vm0, %v277_v51  ;;  %v281_v53 = vmul.f32 %v560_v44, %v280_v50  ;;  %471 = vmatpush.msrb.mxu0 %v449_v49  ;;  %v448_v50 = vld [vmem:[%s869_s11 + $0x28] sm:$0xff]  ;;  %v447_v51 = vld [vmem:[%s869_s11 + $0x20] sm:$0xff] }
 0x403   :  { %522 = vmatpush.msrb.mxu2 %v449_v49 }
 0x404   :  { %v282_v55 = vadd.f32 %v560_v44, %v281_v53  ;;  %472 = vmatpush.msrb.mxu0 %v448_v50  ;;  %v445_v53 = vld [vmem:[%s869_s11 + $0x10] sm:$0xff] }
 0x405   :  { %523 = vmatpush.msrb.mxu2 %v448_v50 }
 0x406   :  { %v286_v58 = vsel %vm285_vm2, %v560_v44, %v282_v55  ;;  %473 = vmatpush.msrb.mxu0 %v447_v51  ;;  %v443_v55 = vld [vmem:[%s869_s11] sm:$0xff] }
 0x407   :  { %v291_v59 = vsel %vm288_vm3, %v290_v56, %v286_v58  ;;  %524 = vmatpush.msrb.mxu2 %v447_v51  ;;  %v545_v56 = vld [vmem:[%s868_s10] ss:$0 sm:$0xff] }
 0x408   :  { %v292_v60 = vmul.f32 %v291_v59, %v219_v57  ;;  %474 = vmatpush.msrb.mxu0 %v446_v52 }
 0x409   :  { %525 = vmatpush.msrb.mxu2 %v446_v52 }
 0x40a   :  { %514 = vmatmul.msk.f32.gmra.mxu3 %vm55_vm0, %v292_v60  ;;  %475 = vmatpush.msrb.mxu0 %v445_v53 }
 0x40b   :  { %526 = vmatpush.msrb.mxu2 %v445_v53 }
 0x40c   :  { %476 = vmatpush.msrb.mxu0 %v444_v54 }
 0x40d   :  { %527 = vmatpush.msrb.mxu2 %v444_v54 }
 0x40e   :  { %477 = vmatpush.msrb.mxu0 %v443_v55 }
 0x40f   :  { %528 = vmatpush.msrb.mxu2 %v443_v55 }
 0x485   :  { %v324_v62 = vpop.f32.mrf.mxu3 }
 0x486   :  { %v325_v63 = vadd.f32 %v542_v61, %v324_v62 }
 0x488   :  { %v784_v1 = vadd.f32 %v325_v63, %v683_v0 }
 0x48a   :  { %v334_v3 = vsel %vm55_vm0, %v784_v1, 0.0 }
 0x48b   :  { %335 = vadd.xlane.f32.xlu2 %v334_v3 }
 0x48d   :  { %v327_v4 = vpop.f32.mrf.mxu3 }
 0x48e   :  { %v328_v5 = vadd.f32 %v542_v61, %v327_v4 }
 0x490   :  { %v789_v6 = vadd.f32 %v328_v5, %v690_v2 }
 0x492   :  { %v337_v7 = vsel %vm55_vm0, %v789_v6, 0.0 }
 0x493   :  { %338 = vadd.xlane.f32.xlu0 %v337_v7 }
 0x4fe   :  { %v336_v8 = vpop.xlane.xlu2 %335 }
 0x4ff   :  { %v340_v9 = vmul.f32 %v336_v8, %v694_v10 }
 0x501   :  { %v342_v11 = vsub.f32 %v784_v1, %v340_v9 }
 0x503   :  { %v344_v0 = vmul.f32 %v342_v11, %v342_v11 }
 0x505   :  { %v346_v12 = vsel %vm55_vm0, %v344_v0, 0.0 }
 0x506   :  { %v339_v13 = vpop.xlane.xlu0 %338  ;;  %347 = vadd.xlane.f32.xlu1 %v346_v12 }
 0x507   :  { %v341_v14 = vmul.f32 %v339_v13, %v694_v10 }
 0x509   :  { %v343_v15 = vsub.f32 %v789_v6, %v341_v14 }
 0x50b   :  { %v345_v2 = vmul.f32 %v343_v15, %v343_v15 }
 0x50d   :  { %v349_v16 = vsel %vm55_vm0, %v345_v2, 0.0 }
 0x50e   :  { %350 = vadd.xlane.f32.xlu2 %v349_v16 }
 0x579   :  { %v348_v21 = vpop.xlane.xlu1 %347 }
 0x57a   :  { %v352_v22 = vmul.f32 %v348_v21, %v694_v10 }
 0x57c   :  { %v354_v23 = vadd.f32 1e-05, %v352_v22 }
 0x57e   :  { %561 = vrsqrt.f32 %v354_v23  ;;  %vm362_vm5 = vweird.f32 %v354_v23 }
 0x581   :  { %v351_v24 = vpop.xlane.xlu2 %350 }
 0x582   :  { %v353_v25 = vmul.f32 %v351_v24, %v694_v10 }
 0x584   :  { %v562_v26 = vpop.eup %561  ;;  %v355_v27 = vadd.f32 1e-05, %v353_v25 }
 0x585   :  { %v357_v28 = vmul.f32 %v562_v26, %v354_v23  ;;  %vm363_vm4 = vweird.f32 %v562_v26 }
 0x586   :  { %563 = vrsqrt.f32 %v355_v27  ;;  %vm364_vm6 = vmor %vm362_vm5, %vm363_vm4  ;;  %vm372_vm8 = vweird.f32 %v355_v27 }
 0x587   :  { %v358_v29 = vmul.f32 %v562_v26, %v357_v28 }
 0x589   :  { %v359_v30 = vmul.f32 0.5, %v358_v29 }
 0x58b   :  { %v360_v31 = vsub.f32 1.5, %v359_v30 }
 0x58c   :  { %v564_v32 = vpop.eup %563 }
 0x58d   :  { %v361_v33 = vmul.f32 %v562_v26, %v360_v31  ;;  %v367_v34 = vmul.f32 %v564_v32, %v355_v27  ;;  %vm373_vm7 = vweird.f32 %v564_v32 }
 0x58e   :  { %vm374_vm9 = vmor %vm372_vm8, %vm373_vm7 }
 0x58f   :  { %v365_v36 = vsel %vm364_vm6, %v562_v26, %v361_v33  ;;  %v368_v37 = vmul.f32 %v564_v32, %v367_v34 }
 0x590   :  { %v376_v10 = vmul.f32 %v365_v36, %v342_v11 }
 0x591   :  { %v369_v39 = vmul.f32 0.5, %v368_v37 }
 0x592   :  { %v381_v40 = vmul.f32 %v543_v35, %v376_v10 }
 0x593   :  { %v370_v41 = vsub.f32 1.5, %v369_v39 }
 0x594   :  { %v386_v42 = vadd.f32 %v544_v38, %v381_v40 }
 0x595   :  { %v371_v43 = vmul.f32 %v564_v32, %v370_v41 }
 0x596   :  { %515 = vmatmul.msk.f32.vlgmr.msrb.gmra.mxu1 %vm55_vm0, %v386_v42 }
 0x597   :  { %v375_v44 = vsel %vm374_vm9, %v564_v32, %v371_v43 }
 0x598   :  { %v377_v45 = vmul.f32 %v375_v44, %v343_v15 }
 0x59a   :  { %v382_v46 = vmul.f32 %v543_v35, %v377_v45 }
 0x59c   :  { %v387_v47 = vadd.f32 %v544_v38, %v382_v46 }
 0x59e   :  { %516 = vmatmul.msk.f32.gmra.mxu1 %vm55_vm0, %v387_v47 }
 0x613   :  { %v419_v57 = vpop.f32.mrf.mxu1 }
 0x614   :  { %v420_v58 = vadd.f32 %v545_v56, %v419_v57 }
 0x616   :  { %v427_v59 = vmul.f32 0.044715, %v420_v58  ;;  %v425_v12 = vmul.f32 0.5, %v420_v58 }
 0x618   :  { %v429_v60 = vmul.f32 %v427_v59, %v420_v58 }
 0x61a   :  { %v431_v61 = vmul.f32 %v429_v60, %v420_v58 }
 0x61b   :  { %v422_v62 = vpop.f32.mrf.mxu1 }
 0x61c   :  { %v423_v63 = vadd.f32 %v545_v56, %v422_v62  ;;  %v433_v3 = vadd.f32 %v431_v61, %v420_v58 }
 0x61e   :  { %v428_v4 = vmul.f32 0.044715, %v423_v63  ;;  %v435_v5 = vmul.f32 0.7978846, %v433_v3  ;;  %v426_v2 = vmul.f32 0.5, %v423_v63 }
 0x620   :  { %v430_v7 = vmul.f32 %v428_v4, %v423_v63  ;;  %565 = vtanh.f32 %v435_v5 }
 0x622   :  { %v432_v8 = vmul.f32 %v430_v7, %v423_v63 }
 0x624   :  { %v434_v9 = vadd.f32 %v432_v8, %v423_v63 }
 0x626   :  { %v566_v11 = vpop.eup %565  ;;  %v436_v0 = vmul.f32 0.7978846, %v434_v9 }
 0x627   :  { %v439_v13 = vadd.f32 1.0, %v566_v11 }
 0x628   :  { %567 = vtanh.f32 %v436_v0 }
 0x629   :  { %v441_v14 = vmul.f32 %v439_v13, %v425_v12 }
 0x62b   :  { %517 = vmatmul.msk.f32.vlgmr.msrb.gmra.mxu0 %vm455_vm10, %v441_v14 }
 0x62e   :  { %v568_v15 = vpop.eup %567 }
 0x62f   :  { %v440_v16 = vadd.f32 1.0, %v568_v15 }
 0x631   :  { %v442_v17 = vmul.f32 %v440_v16, %v426_v2 }
 0x633   :  { %518 = vmatmul.msk.f32.vlgmr.msrb.gmra.mxu2 %vm455_vm10, %v442_v17 }
 0x6a8   :  { %v479_v19 = vpop.f32.mrf.mxu0 }
 0x6a9   :  { %v480_v20 = vadd.f32 %v546_v18, %v479_v19 }
 0x6ab   :  { %v485_v21 = vadd.f32 %v480_v20, %v784_v1 }
 0x6ad   :  { %487 = vst.msk [vmem:[#allocation2] sm:$0xff] %vm55_vm0, %v485_v21 }
 0x6b6   :  { %v482_v22 = vpop.f32.mrf.mxu2 }
 0x6b7   :  { %v483_v23 = vadd.f32 %v546_v18, %v482_v22 }
 0x6b9   :  { %v486_v24 = vadd.f32 %v483_v23, %v789_v6 }
 0x6bb   :  { %488 = vst.msk [vmem:[#allocation2 + $0x8] sm:$0xff] %vm55_vm0, %v486_v24 }
 0x6bc   :  { %501 = dma.vmem_to_hbm [thread:$0]  %s494_s19, 256, %s496_s0, [#allocation3], %s598_s12, %s598_s12, %s599_s9  }
 0x6bd   :  { %593 = dma.done.wait [#allocation3], 256  }
 0x6be   :  { %594 = vsyncadd [#allocation3], 4294967040 }
 0x6bf   :  { %506 = vsyncpa [#allocation3], 1 }

</bundles_post_ra>
